<compile_context>
chip_gen: v6e
topology: v6e:2x2x1
jax: 0.10.0
libtpu: 0.0.40
codegen_flags: <defaults>
</compile_context>

<pallas_src>
import functools

import jax
import jax.numpy as jnp
from jax.experimental import pallas as pl
from jax.experimental.pallas import tpu as pltpu

EPS = 1e-5
F_PAD = 128                  # lane-dense working width for hidden features
N_VEC_ROWS = 16              # 12 rows used, padded up for a clean sublane layout
SINGLE_BLOCK_MAX_ROWS = 512  # above this, use the batch-tiled two-pass path
DEFAULT_TILE = 1024          # batch-tile cap (safe on v5e/v6e/v7x scoped VMEM)


# =============================================================================
# Single-block kernel (small batches)
# =============================================================================
def _critic_single_kernel(scal_ref, x_ref, vec_ref, w_ref, out_ref, *, state_size):
    alpha = scal_ref[0]      # shared PReLU alpha (SMEM scalar)
    c4 = scal_ref[1]         # final-layer bias

    def bn_train(x, g, b):
        mu = jnp.mean(x, axis=0, keepdims=True)
        d = x - mu
        var = jnp.mean(d * d, axis=0, keepdims=True)
        return d * jax.lax.rsqrt(var + EPS) * g + b

    def prelu(x):
        return jnp.where(x > 0, x, alpha * x)

    vecs = vec_ref[...]      # (16, 128) packed gamma/beta/bias/w4 rows

    # Layer 1 at the true state width (input arrives unpadded).
    s = x_ref[...]                                           # (B, S)
    s = bn_train(s, vecs[0:1, :state_size], vecs[1:2, :state_size])
    s = jnp.dot(s, w_ref[0, :state_size, :], preferred_element_type=jnp.float32)
    s = prelu(s + vecs[2:3, :])

    # Layers 2-3: lane-dense width 128.  Padded lanes stay exactly zero
    # through BN -> Linear -> PReLU (zero gamma/beta/bias/weight rows).
    for li in (1, 2):
        s = bn_train(s, vecs[3 * li:3 * li + 1, :], vecs[3 * li + 1:3 * li + 2, :])
        s = jnp.dot(s, w_ref[li], preferred_element_type=jnp.float32)
        s = prelu(s + vecs[3 * li + 2:3 * li + 3, :])

    # Layer 4 (value head, out_features=1): BN -> VPU dot + lane reduction.
    s = bn_train(s, vecs[9:10, :], vecs[10:11, :])
    v = jnp.sum(s * vecs[11:12, :], axis=-1, keepdims=True) + c4
    out_ref[...] = prelu(v).astype(out_ref.dtype)


def _forward_single_block(s, scalars, vecs, weights):
    B, S = s.shape
    vmem = pl.BlockSpec(memory_space=pltpu.MemorySpace.VMEM)
    smem = pl.BlockSpec(memory_space=pltpu.MemorySpace.SMEM)
    return pl.pallas_call(
        functools.partial(_critic_single_kernel, state_size=S),
        out_shape=jax.ShapeDtypeStruct((B, 1), jnp.float32),
        in_specs=[smem, vmem, vmem, vmem],
        out_specs=vmem,
    )(scalars, s.astype(jnp.float32), vecs, weights)


# =============================================================================
# Tiled two-pass kernels (large batches)
# =============================================================================
def _stats_kernel(x_ref, stat_ref, *, n_valid, tb):
    """Pass 1: accumulate per-feature sum / sum-of-squares over batch tiles."""
    t = pl.program_id(0)

    @pl.when(t == 0)
    def _():
        stat_ref[...] = jnp.zeros_like(stat_ref)

    x = x_ref[...]
    # Mask rows that only exist because of edge-tile padding.
    row = t * tb + jax.lax.broadcasted_iota(jnp.int32, x.shape, 0)
    x = jnp.where(row < n_valid, x, 0.0)
    tile_stats = jnp.concatenate(
        [jnp.sum(x, axis=0, keepdims=True),
         jnp.sum(x * x, axis=0, keepdims=True)], axis=0)
    stat_ref[...] += tile_stats


def _apply_kernel(stat_ref, scal_ref, vec_ref, w_ref, x_ref, out_ref, *, li, in_w, inv_n):
    """Pass 2 (hidden layers): global-stat BN -> Linear (MXU) -> PReLU."""
    alpha = scal_ref[0]
    st = stat_ref[...]
    mu = st[0:1, :] * inv_n
    var = jnp.maximum(st[1:2, :] * inv_n - mu * mu, 0.0)

    vecs = vec_ref[...]
    g = vecs[3 * li:3 * li + 1, :in_w]
    b = vecs[3 * li + 1:3 * li + 2, :in_w]
    bias = vecs[3 * li + 2:3 * li + 3, :]

    xn = (x_ref[...] - mu) * jax.lax.rsqrt(var + EPS) * g + b
    y = jnp.dot(xn, w_ref[li, :in_w, :], preferred_element_type=jnp.float32) + bias
    out_ref[...] = jnp.where(y > 0, y, alpha * y)


def _head_kernel(stat_ref, scal_ref, vec_ref, x_ref, out_ref, *, inv_n):
    """Pass 2 (value head): global-stat BN -> VPU dot + lane reduce -> PReLU."""
    alpha = scal_ref[0]
    c4 = scal_ref[1]
    st = stat_ref[...]
    mu = st[0:1, :] * inv_n
    var = jnp.maximum(st[1:2, :] * inv_n - mu * mu, 0.0)

    vecs = vec_ref[...]
    xn = (x_ref[...] - mu) * jax.lax.rsqrt(var + EPS) * vecs[9:10, :] + vecs[10:11, :]
    v = jnp.sum(xn * vecs[11:12, :], axis=-1, keepdims=True) + c4
    out_ref[...] = jnp.where(v > 0, v, alpha * v)


def _stats_call(x, width, tb, n_valid):
    T = pl.cdiv(x.shape[0], tb)
    return pl.pallas_call(
        functools.partial(_stats_kernel, n_valid=n_valid, tb=tb),
        out_shape=jax.ShapeDtypeStruct((2, width), jnp.float32),
        grid=(T,),
        in_specs=[pl.BlockSpec((tb, width), lambda t: (t, 0))],
        out_specs=pl.BlockSpec((2, width), lambda t: (0, 0)),   # resident accumulator
        compiler_params=pltpu.CompilerParams(dimension_semantics=("arbitrary",)),
    )(x)


def _apply_call(stats, scalars, vecs, weights, x, *, li, in_w, tb, inv_n):
    B = x.shape[0]
    T = pl.cdiv(B, tb)
    smem = pl.BlockSpec(memory_space=pltpu.MemorySpace.SMEM)
    return pl.pallas_call(
        functools.partial(_apply_kernel, li=li, in_w=in_w, inv_n=inv_n),
        out_shape=jax.ShapeDtypeStruct((B, F_PAD), jnp.float32),
        grid=(T,),
        in_specs=[
            pl.BlockSpec((2, in_w), lambda t: (0, 0)),               # stats: resident
            smem,                                                    # [alpha, c4]
            pl.BlockSpec((N_VEC_ROWS, F_PAD), lambda t: (0, 0)),     # vec slab: resident
            pl.BlockSpec((3, F_PAD, F_PAD), lambda t: (0, 0, 0)),    # weights: resident
            pl.BlockSpec((tb, in_w), lambda t: (t, 0)),              # batch tile
        ],
        out_specs=pl.BlockSpec((tb, F_PAD), lambda t: (t, 0)),
        compiler_params=pltpu.CompilerParams(dimension_semantics=("parallel",)),
    )(stats, scalars, vecs, weights, x)


def _head_call(stats, scalars, vecs, x, *, tb, inv_n):
    B = x.shape[0]
    T = pl.cdiv(B, tb)
    smem = pl.BlockSpec(memory_space=pltpu.MemorySpace.SMEM)
    return pl.pallas_call(
        functools.partial(_head_kernel, inv_n=inv_n),
        out_shape=jax.ShapeDtypeStruct((B, 1), jnp.float32),
        grid=(T,),
        in_specs=[
            pl.BlockSpec((2, F_PAD), lambda t: (0, 0)),
            smem,
            pl.BlockSpec((N_VEC_ROWS, F_PAD), lambda t: (0, 0)),
            pl.BlockSpec((tb, F_PAD), lambda t: (t, 0)),
        ],
        out_specs=pl.BlockSpec((tb, 1), lambda t: (t, 0)),
        compiler_params=pltpu.CompilerParams(dimension_semantics=("parallel",)),
    )(stats, scalars, vecs, x)


def _forward_tiled(s, scalars, vecs, weights, tile):
    B, S = s.shape
    tb = max(8, (min(tile, B) // 8) * 8)
    inv_n = 1.0 / float(B)
    x = s.astype(jnp.float32)

    # Layer 1 at true state width, layers 2-4 lane-dense at 128.
    stats = _stats_call(x, S, tb, B)
    x = _apply_call(stats, scalars, vecs, weights, x, li=0, in_w=S, tb=tb, inv_n=inv_n)
    for li in (1, 2):
        stats = _stats_call(x, F_PAD, tb, B)
        x = _apply_call(stats, scalars, vecs, weights, x, li=li, in_w=F_PAD, tb=tb, inv_n=inv_n)
    stats = _stats_call(x, F_PAD, tb, B)
    return _head_call(stats, scalars, vecs, x, tb=tb, inv_n=inv_n)


# =============================================================================
# Public forward (matches PPO_Critic.forward(s, a); `a` is unused by the module)
# =============================================================================
@functools.partial(jax.jit, static_argnames=("tile",))
def ppo_critic_forward(s, a, scalars, vecs, weights, tile=DEFAULT_TILE):
    del a  # the critic ignores the action, exactly like the PyTorch module
    B = s.shape[0]
    if B <= SINGLE_BLOCK_MAX_ROWS:
        return _forward_single_block(s, scalars, vecs, weights)
    return _forward_tiled(s, scalars, vecs, weights, tile)


# =============================================================================
# Parameter construction (mimics the PyTorch module's init) and packing
# =============================================================================
def init_params(key, state_size, h1, h2, h3):
    ks = jax.random.split(key, 8)

    def lin(kw, kb, fan_in, fan_out, lim):
        # PyTorch Linear weight is (out, in); we store the transpose (in, out).
        w = jax.random.uniform(kw, (fan_in, fan_out), jnp.float32, -lim, lim)
        blim = 1.0 / jnp.sqrt(float(fan_in))
        b = jax.random.uniform(kb, (1, fan_out), jnp.float32, -blim, blim)
        return w, b

    # weights_init_lim uses weight.size()[0] == out_features => lim = 1/sqrt(out)
    w1, c1 = lin(ks[0], ks[1], state_size, h1, 1.0 / float(h1) ** 0.5)
    w2, c2 = lin(ks[2], ks[3], h1, h2, 1.0 / float(h2) ** 0.5)
    w3, c3 = lin(ks[4], ks[5], h2, h3, 1.0 / float(h3) ** 0.5)
    w4, c4 = lin(ks[6], ks[7], h3, 1, 0.001)

    def bn(n):
        return jnp.ones((1, n), jnp.float32), jnp.zeros((1, n), jnp.float32)

    g1, be1 = bn(state_size)
    g2, be2 = bn(h1)
    g3, be3 = bn(h2)
    g4, be4 = bn(h3)

    alpha = jnp.full((1, 1), 0.25, jnp.float32)  # nn.PReLU() default

    return (g1, be1, w1, c1, g2, be2, w2, c2,
            g3, be3, w3, c3, g4, be4, w4, c4, alpha)


def pack_params(params):
    """Pack the 17 small tensors into 3 lane-dense inputs (done once)."""
    (g1, be1, w1, c1, g2, be2, w2, c2,
     g3, be3, w3, c3, g4, be4, w4, c4, alpha) = params
    assert max(w1.shape[0], w1.shape[1], w2.shape[1], w3.shape[1]) <= F_PAD

    def pad_row(v):
        v = jnp.asarray(v, jnp.float32).reshape(-1)
        return jnp.pad(v, (0, F_PAD - v.shape[0]))

    rows = jnp.stack([
        pad_row(g1), pad_row(be1), pad_row(c1),
        pad_row(g2), pad_row(be2), pad_row(c2),
        pad_row(g3), pad_row(be3), pad_row(c3),
        pad_row(g4), pad_row(be4), pad_row(w4),   # w4: (h3, 1) -> row of len h3
    ])
    vecs = jnp.zeros((N_VEC_ROWS, F_PAD), jnp.float32).at[:rows.shape[0]].set(rows)

    def pad_w(w):
        w = jnp.asarray(w, jnp.float32)
        return jnp.pad(w, ((0, F_PAD - w.shape[0]), (0, F_PAD - w.shape[1])))

    weights = jnp.stack([pad_w(w1), pad_w(w2), pad_w(w3)])       # (3, 128, 128)
    scalars = jnp.array([alpha[0, 0], c4[0, 0]], jnp.float32)    # SMEM: [alpha, c4]
    return scalars, vecs, weights


# =============================================================================
# Pure-JAX reference (uses the *unpacked* params, so it also checks the packing)
# =============================================================================
def _reference(s, params):
    (g1, be1, w1, c1, g2, be2, w2, c2,
     g3, be3, w3, c3, g4, be4, w4, c4, alpha) = params
    a = alpha[0, 0]

    def bn(x, g, b):
        mu = jnp.mean(x, axis=0, keepdims=True)
        var = jnp.mean((x - mu) * (x - mu), axis=0, keepdims=True)
        return (x - mu) * jax.lax.rsqrt(var + EPS) * g + b

    def mm(x, w):
        return jnp.dot(x, w, precision=jax.lax.Precision.HIGHEST)

    def prelu(x):
        return jnp.where(x > 0, x, a * x)

    x = prelu(mm(bn(s, g1, be1), w1) + c1)
    x = prelu(mm(bn(x, g2, be2), w2) + c2)
    x = prelu(mm(bn(x, g3, be3), w3) + c3)
    return prelu(mm(bn(x, g4, be4), w4) + c4)


# =============================================================================
if __name__ == "__main__":
    STATE_SIZE, ACTION_SIZE = 16, 4
    H1 = H2 = H3 = 32

    key = jax.random.PRNGKey(0)
    k_params, k_s, k_a, k_big = jax.random.split(key, 4)

    params = init_params(k_params, STATE_SIZE, H1, H2, H3)
    scalars, vecs, weights = pack_params(params)

    # --- small batch: single-block fast path (matches the module's demo use) ---
    B_SMALL = 8
    s_small = jax.random.normal(k_s, (B_SMALL, STATE_SIZE), jnp.float32)
    a_small = jax.random.normal(k_a, (B_SMALL, ACTION_SIZE), jnp.float32)  # ignored

    v_small = jax.block_until_ready(
        ppo_critic_forward(s_small, a_small, scalars, vecs, weights))
    ref_small = _reference(s_small, params)
    assert v_small.shape == (B_SMALL, 1)
    assert jnp.allclose(v_small, ref_small, atol=1e-3, rtol=1e-3), \
        "single-block path mismatch vs pure-JAX reference"

    # --- larger batch: batch-tiled two-pass path (global BN stats, tiled grid) ---
    B_BIG = 1024
    s_big = jax.random.normal(k_big, (B_BIG, STATE_SIZE), jnp.float32)
    a_big = jnp.zeros((B_BIG, ACTION_SIZE), jnp.float32)  # ignored

    v_big = jax.block_until_ready(
        ppo_critic_forward(s_big, a_big, scalars, vecs, weights, tile=256))
    ref_big = _reference(s_big, params)
    assert v_big.shape == (B_BIG, 1)
    assert jnp.allclose(v_big, ref_big, atol=1e-3, rtol=1e-3), \
        "tiled path mismatch vs pure-JAX reference"

    print("KERNEL_OK")
</pallas_src>

<mosaic_0001>
module attributes {stable_mosaic.version = 11 : i64} {
  func.func @_critic_single_kernel(%arg0: memref<2xf32, #tpu.memory_space<smem>>, %arg1: memref<8x16xf32, #tpu.memory_space<vmem>>, %arg2: memref<16x128xf32, #tpu.memory_space<vmem>>, %arg3: memref<3x128x128xf32, #tpu.memory_space<vmem>>, %arg4: memref<8x1xf32, #tpu.memory_space<vmem>>) attributes {dimension_semantics = [], scalar_prefetch = 0 : i64, scratch_operands = 0 : i64, tpu.core_type = #tpu.core_type<tc>} {
    %c0 = arith.constant 0 : index
    %0 = memref.load %arg0[%c0] : memref<2xf32, #tpu.memory_space<smem>>
    %c1 = arith.constant 1 : index
    %1 = memref.load %arg0[%c1] : memref<2xf32, #tpu.memory_space<smem>>
    %c0_0 = arith.constant 0 : index
    %c0_1 = arith.constant 0 : index
    %2 = vector.load %arg2[%c0_0, %c0_1] : memref<16x128xf32, #tpu.memory_space<vmem>>, vector<16x128xf32>
    %c0_2 = arith.constant 0 : index
    %c0_3 = arith.constant 0 : index
    %3 = vector.load %arg1[%c0_2, %c0_3] : memref<8x16xf32, #tpu.memory_space<vmem>>, vector<8x16xf32>
    %4 = vector.extract_strided_slice %2 {offsets = [0, 0], sizes = [1, 16], strides = [1, 1]} : vector<16x128xf32> to vector<1x16xf32>
    %5 = vector.extract_strided_slice %2 {offsets = [1, 0], sizes = [1, 16], strides = [1, 1]} : vector<16x128xf32> to vector<1x16xf32>
    %cst = arith.constant dense<0.000000e+00> : vector<16xf32>
    %6 = vector.multi_reduction <add>, %3, %cst [0] : vector<8x16xf32> to vector<16xf32>
    %7 = vector.shape_cast %6 : vector<16xf32> to vector<1x16xf32>
    %cst_4 = arith.constant 8.000000e+00 : f32
    %8 = vector.broadcast %cst_4 : f32 to vector<1x16xf32>
    %9 = arith.divf %7, %8 : vector<1x16xf32>
    %10 = vector.broadcast %9 : vector<1x16xf32> to vector<8x16xf32>
    %11 = arith.subf %3, %10 : vector<8x16xf32>
    %12 = arith.mulf %11, %11 : vector<8x16xf32>
    %cst_5 = arith.constant dense<0.000000e+00> : vector<16xf32>
    %13 = vector.multi_reduction <add>, %12, %cst_5 [0] : vector<8x16xf32> to vector<16xf32>
    %14 = vector.shape_cast %13 : vector<16xf32> to vector<1x16xf32>
    %cst_6 = arith.constant 8.000000e+00 : f32
    %15 = vector.broadcast %cst_6 : f32 to vector<1x16xf32>
    %16 = arith.divf %14, %15 : vector<1x16xf32>
    %cst_7 = arith.constant 9.99999974E-6 : f32
    %17 = vector.broadcast %cst_7 : f32 to vector<1x16xf32>
    %18 = arith.addf %16, %17 : vector<1x16xf32>
    %19 = math.rsqrt %18 : vector<1x16xf32>
    %20 = vector.broadcast %19 : vector<1x16xf32> to vector<8x16xf32>
    %21 = arith.mulf %11, %20 : vector<8x16xf32>
    %22 = vector.broadcast %4 : vector<1x16xf32> to vector<8x16xf32>
    %23 = arith.mulf %21, %22 : vector<8x16xf32>
    %24 = vector.broadcast %5 : vector<1x16xf32> to vector<8x16xf32>
    %25 = arith.addf %23, %24 : vector<8x16xf32>
    %c0_8 = arith.constant 0 : index
    %c0_9 = arith.constant 0 : index
    %c0_10 = arith.constant 0 : index
    %26 = vector.load %arg3[%c0_8, %c0_9, %c0_10] : memref<3x128x128xf32, #tpu.memory_space<vmem>>, vector<1x16x128xf32>
    %27 = vector.shape_cast %26 : vector<1x16x128xf32> to vector<16x128xf32>
    %cst_11 = arith.constant dense<0.000000e+00> : vector<8x128xf32>
    %28 = tpu.matmul %25, %27, %cst_11 {dimension_numbers = #tpu.dot_dimension_numbers<[1], [0], [0], [1], [0, 0, 1, 1], [], []>} : vector<8x16xf32>, vector<16x128xf32>, vector<8x128xf32> -> vector<8x128xf32>
    %29 = vector.extract_strided_slice %2 {offsets = [2, 0], sizes = [1, 128], strides = [1, 1]} : vector<16x128xf32> to vector<1x128xf32>
    %30 = vector.broadcast %29 : vector<1x128xf32> to vector<8x128xf32>
    %31 = arith.addf %28, %30 : vector<8x128xf32>
    %cst_12 = arith.constant 0.000000e+00 : f32
    %32 = vector.broadcast %cst_12 : f32 to vector<8x128xf32>
    %33 = arith.cmpf ogt, %31, %32 : vector<8x128xf32>
    %34 = vector.broadcast %0 : f32 to vector<8x128xf32>
    %35 = arith.mulf %34, %31 : vector<8x128xf32>
    %36 = arith.select %33, %31, %35 : vector<8x128xi1>, vector<8x128xf32>
    %37 = vector.extract_strided_slice %2 {offsets = [3, 0], sizes = [1, 128], strides = [1, 1]} : vector<16x128xf32> to vector<1x128xf32>
    %38 = vector.extract_strided_slice %2 {offsets = [4, 0], sizes = [1, 128], strides = [1, 1]} : vector<16x128xf32> to vector<1x128xf32>
    %cst_13 = arith.constant dense<0.000000e+00> : vector<128xf32>
    %39 = vector.multi_reduction <add>, %36, %cst_13 [0] : vector<8x128xf32> to vector<128xf32>
    %40 = vector.shape_cast %39 : vector<128xf32> to vector<1x128xf32>
    %cst_14 = arith.constant 8.000000e+00 : f32
    %41 = vector.broadcast %cst_14 : f32 to vector<1x128xf32>
    %42 = arith.divf %40, %41 : vector<1x128xf32>
    %43 = vector.broadcast %42 : vector<1x128xf32> to vector<8x128xf32>
    %44 = arith.subf %36, %43 : vector<8x128xf32>
    %45 = arith.mulf %44, %44 : vector<8x128xf32>
    %cst_15 = arith.constant dense<0.000000e+00> : vector<128xf32>
    %46 = vector.multi_reduction <add>, %45, %cst_15 [0] : vector<8x128xf32> to vector<128xf32>
    %47 = vector.shape_cast %46 : vector<128xf32> to vector<1x128xf32>
    %cst_16 = arith.constant 8.000000e+00 : f32
    %48 = vector.broadcast %cst_16 : f32 to vector<1x128xf32>
    %49 = arith.divf %47, %48 : vector<1x128xf32>
    %cst_17 = arith.constant 9.99999974E-6 : f32
    %50 = vector.broadcast %cst_17 : f32 to vector<1x128xf32>
    %51 = arith.addf %49, %50 : vector<1x128xf32>
    %52 = math.rsqrt %51 : vector<1x128xf32>
    %53 = vector.broadcast %52 : vector<1x128xf32> to vector<8x128xf32>
    %54 = arith.mulf %44, %53 : vector<8x128xf32>
    %55 = vector.broadcast %37 : vector<1x128xf32> to vector<8x128xf32>
    %56 = arith.mulf %54, %55 : vector<8x128xf32>
    %57 = vector.broadcast %38 : vector<1x128xf32> to vector<8x128xf32>
    %58 = arith.addf %56, %57 : vector<8x128xf32>
    %c1_18 = arith.constant 1 : index
    %c0_19 = arith.constant 0 : index
    %c0_20 = arith.constant 0 : index
    %59 = vector.load %arg3[%c1_18, %c0_19, %c0_20] : memref<3x128x128xf32, #tpu.memory_space<vmem>>, vector<1x128x128xf32>
    %60 = vector.shape_cast %59 : vector<1x128x128xf32> to vector<128x128xf32>
    %cst_21 = arith.constant dense<0.000000e+00> : vector<8x128xf32>
    %61 = tpu.matmul %58, %60, %cst_21 {dimension_numbers = #tpu.dot_dimension_numbers<[1], [0], [0], [1], [0, 0, 1, 1], [], []>} : vector<8x128xf32>, vector<128x128xf32>, vector<8x128xf32> -> vector<8x128xf32>
    %62 = vector.extract_strided_slice %2 {offsets = [5, 0], sizes = [1, 128], strides = [1, 1]} : vector<16x128xf32> to vector<1x128xf32>
    %63 = vector.broadcast %62 : vector<1x128xf32> to vector<8x128xf32>
    %64 = arith.addf %61, %63 : vector<8x128xf32>
    %cst_22 = arith.constant 0.000000e+00 : f32
    %65 = vector.broadcast %cst_22 : f32 to vector<8x128xf32>
    %66 = arith.cmpf ogt, %64, %65 : vector<8x128xf32>
    %67 = vector.broadcast %0 : f32 to vector<8x128xf32>
    %68 = arith.mulf %67, %64 : vector<8x128xf32>
    %69 = arith.select %66, %64, %68 : vector<8x128xi1>, vector<8x128xf32>
    %70 = vector.extract_strided_slice %2 {offsets = [6, 0], sizes = [1, 128], strides = [1, 1]} : vector<16x128xf32> to vector<1x128xf32>
    %71 = vector.extract_strided_slice %2 {offsets = [7, 0], sizes = [1, 128], strides = [1, 1]} : vector<16x128xf32> to vector<1x128xf32>
    %cst_23 = arith.constant dense<0.000000e+00> : vector<128xf32>
    %72 = vector.multi_reduction <add>, %69, %cst_23 [0] : vector<8x128xf32> to vector<128xf32>
    %73 = vector.shape_cast %72 : vector<128xf32> to vector<1x128xf32>
    %cst_24 = arith.constant 8.000000e+00 : f32
    %74 = vector.broadcast %cst_24 : f32 to vector<1x128xf32>
    %75 = arith.divf %73, %74 : vector<1x128xf32>
    %76 = vector.broadcast %75 : vector<1x128xf32> to vector<8x128xf32>
    %77 = arith.subf %69, %76 : vector<8x128xf32>
    %78 = arith.mulf %77, %77 : vector<8x128xf32>
    %cst_25 = arith.constant dense<0.000000e+00> : vector<128xf32>
    %79 = vector.multi_reduction <add>, %78, %cst_25 [0] : vector<8x128xf32> to vector<128xf32>
    %80 = vector.shape_cast %79 : vector<128xf32> to vector<1x128xf32>
    %cst_26 = arith.constant 8.000000e+00 : f32
    %81 = vector.broadcast %cst_26 : f32 to vector<1x128xf32>
    %82 = arith.divf %80, %81 : vector<1x128xf32>
    %cst_27 = arith.constant 9.99999974E-6 : f32
    %83 = vector.broadcast %cst_27 : f32 to vector<1x128xf32>
    %84 = arith.addf %82, %83 : vector<1x128xf32>
    %85 = math.rsqrt %84 : vector<1x128xf32>
    %86 = vector.broadcast %85 : vector<1x128xf32> to vector<8x128xf32>
    %87 = arith.mulf %77, %86 : vector<8x128xf32>
    %88 = vector.broadcast %70 : vector<1x128xf32> to vector<8x128xf32>
    %89 = arith.mulf %87, %88 : vector<8x128xf32>
    %90 = vector.broadcast %71 : vector<1x128xf32> to vector<8x128xf32>
    %91 = arith.addf %89, %90 : vector<8x128xf32>
    %c2 = arith.constant 2 : index
    %c0_28 = arith.constant 0 : index
    %c0_29 = arith.constant 0 : index
    %92 = vector.load %arg3[%c2, %c0_28, %c0_29] : memref<3x128x128xf32, #tpu.memory_space<vmem>>, vector<1x128x128xf32>
    %93 = vector.shape_cast %92 : vector<1x128x128xf32> to vector<128x128xf32>
    %cst_30 = arith.constant dense<0.000000e+00> : vector<8x128xf32>
    %94 = tpu.matmul %91, %93, %cst_30 {dimension_numbers = #tpu.dot_dimension_numbers<[1], [0], [0], [1], [0, 0, 1, 1], [], []>} : vector<8x128xf32>, vector<128x128xf32>, vector<8x128xf32> -> vector<8x128xf32>
    %95 = vector.extract_strided_slice %2 {offsets = [8, 0], sizes = [1, 128], strides = [1, 1]} : vector<16x128xf32> to vector<1x128xf32>
    %96 = vector.broadcast %95 : vector<1x128xf32> to vector<8x128xf32>
    %97 = arith.addf %94, %96 : vector<8x128xf32>
    %cst_31 = arith.constant 0.000000e+00 : f32
    %98 = vector.broadcast %cst_31 : f32 to vector<8x128xf32>
    %99 = arith.cmpf ogt, %97, %98 : vector<8x128xf32>
    %100 = vector.broadcast %0 : f32 to vector<8x128xf32>
    %101 = arith.mulf %100, %97 : vector<8x128xf32>
    %102 = arith.select %99, %97, %101 : vector<8x128xi1>, vector<8x128xf32>
    %103 = vector.extract_strided_slice %2 {offsets = [9, 0], sizes = [1, 128], strides = [1, 1]} : vector<16x128xf32> to vector<1x128xf32>
    %104 = vector.extract_strided_slice %2 {offsets = [10, 0], sizes = [1, 128], strides = [1, 1]} : vector<16x128xf32> to vector<1x128xf32>
    %cst_32 = arith.constant dense<0.000000e+00> : vector<128xf32>
    %105 = vector.multi_reduction <add>, %102, %cst_32 [0] : vector<8x128xf32> to vector<128xf32>
    %106 = vector.shape_cast %105 : vector<128xf32> to vector<1x128xf32>
    %cst_33 = arith.constant 8.000000e+00 : f32
    %107 = vector.broadcast %cst_33 : f32 to vector<1x128xf32>
    %108 = arith.divf %106, %107 : vector<1x128xf32>
    %109 = vector.broadcast %108 : vector<1x128xf32> to vector<8x128xf32>
    %110 = arith.subf %102, %109 : vector<8x128xf32>
    %111 = arith.mulf %110, %110 : vector<8x128xf32>
    %cst_34 = arith.constant dense<0.000000e+00> : vector<128xf32>
    %112 = vector.multi_reduction <add>, %111, %cst_34 [0] : vector<8x128xf32> to vector<128xf32>
    %113 = vector.shape_cast %112 : vector<128xf32> to vector<1x128xf32>
    %cst_35 = arith.constant 8.000000e+00 : f32
    %114 = vector.broadcast %cst_35 : f32 to vector<1x128xf32>
    %115 = arith.divf %113, %114 : vector<1x128xf32>
    %cst_36 = arith.constant 9.99999974E-6 : f32
    %116 = vector.broadcast %cst_36 : f32 to vector<1x128xf32>
    %117 = arith.addf %115, %116 : vector<1x128xf32>
    %118 = math.rsqrt %117 : vector<1x128xf32>
    %119 = vector.broadcast %118 : vector<1x128xf32> to vector<8x128xf32>
    %120 = arith.mulf %110, %119 : vector<8x128xf32>
    %121 = vector.broadcast %103 : vector<1x128xf32> to vector<8x128xf32>
    %122 = arith.mulf %120, %121 : vector<8x128xf32>
    %123 = vector.broadcast %104 : vector<1x128xf32> to vector<8x128xf32>
    %124 = arith.addf %122, %123 : vector<8x128xf32>
    %125 = vector.extract_strided_slice %2 {offsets = [11, 0], sizes = [1, 128], strides = [1, 1]} : vector<16x128xf32> to vector<1x128xf32>
    %126 = vector.broadcast %125 : vector<1x128xf32> to vector<8x128xf32>
    %127 = arith.mulf %124, %126 : vector<8x128xf32>
    %cst_37 = arith.constant dense<0.000000e+00> : vector<8xf32>
    %128 = vector.multi_reduction <add>, %127, %cst_37 [1] : vector<8x128xf32> to vector<8xf32>
    %129 = vector.shape_cast %128 : vector<8xf32> to vector<8x1xf32>
    %130 = vector.broadcast %1 : f32 to vector<8x1xf32>
    %131 = arith.addf %129, %130 : vector<8x1xf32>
    %cst_38 = arith.constant 0.000000e+00 : f32
    %132 = vector.broadcast %cst_38 : f32 to vector<8x1xf32>
    %133 = arith.cmpf ogt, %131, %132 : vector<8x1xf32>
    %134 = vector.broadcast %0 : f32 to vector<8x1xf32>
    %135 = arith.mulf %134, %131 : vector<8x1xf32>
    %136 = arith.select %133, %131, %135 : vector<8x1xi1>, vector<8x1xf32>
    %c0_39 = arith.constant 0 : index
    %c0_40 = arith.constant 0 : index
    %137 = vector.load %arg4[%c0_39, %c0_40] : memref<8x1xf32, #tpu.memory_space<vmem>>, vector<8x1xf32>
    tpu.vector_store %arg4[%c0_39, %c0_40], %136 {strides = array<i32>} : memref<8x1xf32, #tpu.memory_space<vmem>>, vector<8x1xf32>,
    return
  }
}

</mosaic_0001>

<bundles_post_ra>
// kernel: ppo_critic_forward.1
= control target key start
LH: loop header
LB: loop body
LE: loop exit
PB: predicated region body
PF: predicated region fallthrough
CT: control target
= control target key end

     0   :  { %9 = vsyncpa [#allocation4], 0  ;;  %s835_s0 = inlined_call_operand.vmem [shape: f32[2], index: 0, kind: input, shape index: {}]   ;;  %s836_s1 = inlined_call_operand.hbm [shape: f32[8,16], index: 1, kind: input, shape index: {}]   ;;  %s837_s2 = inlined_call_operand.hbm [shape: f32[16,128], index: 2, kind: input, shape index: {}]   ;;  %s838_s3 = inlined_call_operand.hbm [shape: f32[3,128,128], index: 3, kind: input, shape index: {}]   ;;  %s839_s4 = inlined_call_operand.vmem [shape: f32[8,1], index: 4, kind: output, shape index: {}]  }
   0x1   :  { %10 = vsyncpa [#allocation3], 0 }
   0x2   :  { %11 = vsyncpa [#allocation7], 0  ;;  %s696_s15 = smov [#allocation6]   ;;  %s18_s19 = sshll.u32 %s835_s0, 4  ;;  %s19_s19 = int_to_ptr.vmem [resolvable:$true] %s18_s19 }
   0x3   :  { %s37_s16 = sshll.u32 %s696_s15, 4  ;;  %s38_s16 = int_to_ptr.vmem [resolvable:$true] %s37_s16 }
   0x4   :  { %s626_s20 = scalar_lea.vmem %s38_s16, 256  ;;  %p631_p1 = scmp.lt.s32.totalorder %s38_s16, %s38_s16 }
   0x5   :  { %p627_p0 = scmp.ne.s32.totalorder %s38_s16, %s626_s20  ;;  %p632_p2 = scmp.lt.s32.totalorder %s626_s20, %s626_s20 }
   0x7   :  { %p633_p3 = por %p632_p2, %p631_p1 }
   0x9   :  { %p634_p4 = pnand %p633_p3, %p627_p0 }
   0xb   :  { %637 = shalt.err (!%p634_p4)
}
   0xc   :  { %s697_s21 = smov 128   ;;  %s698_s22 = smov 8  }
   0xd   :  { %43 = dma.hbm_to_vmem [thread:$0]  %s837_s2, 256, %s38_s16, [#allocation7], %s697_s21, %s697_s21, %s698_s22  }
   0xe   :  { %s638_s25 = scalar_lea.vmem %s19_s19, 16  ;;  %p643_p6 = scmp.lt.s32.totalorder %s19_s19, %s19_s19 }
   0xf   :  { %p639_p5 = scmp.ne.s32.totalorder %s19_s19, %s638_s25  ;;  %p644_p7 = scmp.lt.s32.totalorder %s638_s25, %s638_s25 }
  0x11   :  { %p645_p8 = por %p644_p7, %p643_p6 }
  0x13   :  { %p646_p9 = pnand %p645_p8, %p639_p5 }
  0x15   :  { %649 = shalt.err (!%p646_p9)
}
  0x16   :  { %s699_s0 = smov [#allocation2]   ;;  %s700_s26 = smov [#allocation5]  }
  0x17   :  { %21 = dma.vmem_to_smem %s19_s19, 16, %s699_s0, [#allocation4]  }
  0x18   :  { %s28_s27 = sshll.u32 %s700_s26, 4  ;;  %s701_s28 = smov [#allocation8]   ;;  %s29_s27 = int_to_ptr.vmem [resolvable:$true] %s28_s27 }
  0x19   :  { %s49_s29 = sshll.u32 %s701_s28, 4  ;;  %s658_s30 = scalar_lea.vmem %s29_s27, 128  ;;  %s50_s29 = int_to_ptr.vmem [resolvable:$true] %s49_s29 }
  0x1a   :  { %p659_p10 = scmp.ne.s32.totalorder %s29_s27, %s658_s30  ;;  %p663_p11 = scmp.lt.s32.totalorder %s29_s27, %s29_s27 }
  0x1b   :  { %p664_p12 = scmp.lt.s32.totalorder %s658_s30, %s658_s30 }
  0x1d   :  { %p665_p13 = por %p664_p12, %p663_p11 }
  0x1f   :  { %p666_p0 = pnand %p665_p13, %p659_p10 }
  0x21   :  { %669 = shalt.err (!%p666_p0)
}
  0x22   :  { %31 = dma.hbm_to_vmem [thread:$0]  %s836_s1, 128, %s29_s27, [#allocation3]  }
  0x23   :  { %s678_s6 = scalar_lea.vmem %s50_s29, 6144  ;;  %p683_p2 = scmp.lt.s32.totalorder %s50_s29, %s50_s29 }
  0x24   :  { %p679_p1 = scmp.ne.s32.totalorder %s50_s29, %s678_s6  ;;  %p684_p3 = scmp.lt.s32.totalorder %s678_s6, %s678_s6 }
  0x26   :  { %p685_p4 = por %p684_p3, %p683_p2 }
  0x28   :  { %p686_p5 = pnand %p685_p4, %p679_p1 }
  0x2a   :  { %689 = shalt.err (!%p686_p5)
}
  0x2b   :  { %55 = dma.hbm_to_vmem [thread:$0]  %s838_s3, 6144, %s50_s29, [#allocation7], %s697_s21, %s697_s21, %s698_s22  }
  0x2c   :  { %690 = dma.done.wait [#allocation4], 16  }
  0x2d   :  { %691 = vsyncadd [#allocation4], 4294967280 }
  0x2e   :  { %692 = dma.done.wait [#allocation3], 128  }
  0x2f   :  { %693 = vsyncadd [#allocation3], 4294967168 }
  0x30   :  { %694 = dma.done.wait [#allocation7], 6400  }
  0x31   :  { %695 = vsyncadd [#allocation7], 4294960896 }
  0x32   :  { %68 = sfence }
  0x33   :  { %v108_v0 = vld [vmem:[#allocation8 + $0x8] sm:$0xff]  ;;  %vm74_vm0 = vcmask 130048   ;;  %v702_v1 = vmov 0.0   ;;  %v107_v2 = vld [vmem:[#allocation8] sm:$0xff]  ;;  %vm703_vm1 = vmmov 0   ;;  %v97_v23 = vlaneseq  ;;  %v760_v26 = vld [vmem:[#allocation6] sm:$0xff] }
  0x34   :  { %525 = vmatprep.subr.mxu0 %v702_v1  ;;  %529 = vmatprep.mubr.msk.f32.mxu0 %vm703_vm1, %v702_v1  ;;  %v73_v3 = vld [vmem:[#allocation5] sm:$0xff]  ;;  %v235_v34 = vld [vmem:[#allocation8 + $0xf8] sm:$0xff]  ;;  %v234_v35 = vld [vmem:[#allocation8 + $0xf0] sm:$0xff]  ;;  %s69_s1 = sld [smem:[#allocation2]]  ;;  %vm477_vm6 = vcmask 7168  }
  0x35   :  { %526 = vmatpush3.msra.mxu0 %v108_v0  ;;  %v75_v4 = vsel %vm74_vm0, %v73_v3, 0.0  ;;  %532 = vmatprep.subr.mxu1 %v702_v1  ;;  %v757_v24 = vshrl.u32 %v97_v23, 7  ;;  %v233_v36 = vld [vmem:[#allocation8 + $0xe8] sm:$0xff]  ;;  %v232_v37 = vld [vmem:[#allocation8 + $0xe0] sm:$0xff]  ;;  %v231_v38 = vld [vmem:[#allocation8 + $0xd8] sm:$0xff]  ;;  %s486_s3 = sld [smem:[#allocation2 + $0x1]] }
  0x36   :  { %527 = vmatprep.subr.mxu0 %v702_v1  ;;  %v76_v5 = vrot.slane %v75_v4, 4  ;;  %564 = vmatprep.mubr.msk.f32.mxu1 %vm703_vm1, %v702_v1  ;;  %v230_v39 = vld [vmem:[#allocation8 + $0xd0] sm:$0xff]  ;;  %v229_v40 = vld [vmem:[#allocation8 + $0xc8] sm:$0xff]  ;;  %v228_v41 = vld [vmem:[#allocation8 + $0xc0] sm:$0xff] }
  0x37   :  { %528 = vmatpush3.msra.mxu0 %v107_v2  ;;  %v99_v25 = vsub.s32 0, %v757_v24  ;;  %v104_v27 = vsub.s32 1, %v757_v24  ;;  %533 = vmatpush3.msra.mxu1 %v235_v34  ;;  %v227_v42 = vld [vmem:[#allocation8 + $0xb8] sm:$0xff]  ;;  %v226_v43 = vld [vmem:[#allocation8 + $0xb0] sm:$0xff]  ;;  %v225_v44 = vld [vmem:[#allocation8 + $0xa8] sm:$0xff]  ;;  %v111_v50 = vsub.s32 2, %v757_v24 }
  0x38   :  { %v77_v6 = vadd.f32 %v76_v5, %v75_v4  ;;  %567 = vmatprep.subr.mxu0 %v702_v1  ;;  %534 = vmatprep.subr.mxu1 %v702_v1  ;;  %v224_v45 = vld [vmem:[#allocation8 + $0xa0] sm:$0xff]  ;;  %v223_v46 = vld [vmem:[#allocation8 + $0x98] sm:$0xff]  ;;  %v222_v47 = vld [vmem:[#allocation8 + $0x90] sm:$0xff] }
  0x39   :  { %v100_v28 = vrot.slane %v760_v26, %v99_v25  ;;  %v105_v31 = vrot.slane %v760_v26, %v104_v27  ;;  %535 = vmatpush3.msra.mxu1 %v234_v35  ;;  %v221_v48 = vld [vmem:[#allocation8 + $0x88] sm:$0xff]  ;;  %v220_v49 = vld [vmem:[#allocation8 + $0x80] sm:$0xff]  ;;  %v112_v51 = vrot.slane %v760_v26, %v111_v50 }
  0x3a   :  { %v78_v7 = vrot.slane %v77_v6, 2  ;;  %536 = vmatprep.subr.mxu1 %v702_v1  ;;  %v791_v53 = vstv %s69_s1  ;;  %v355_v23 = vld [vmem:[#allocation8 + $0x160] sm:$0xff]  ;;  %v348_v34 = vld [vmem:[#allocation8 + $0x128] sm:$0xff] }
  0x3b   :  { %537 = vmatpush3.msra.mxu1 %v233_v36  ;;  %v347_v35 = vld [vmem:[#allocation8 + $0x120] sm:$0xff]  ;;  %v346_v36 = vld [vmem:[#allocation8 + $0x118] sm:$0xff] }
  0x3c   :  { %v79_v8 = vadd.f32 %v78_v7, %v77_v6  ;;  %538 = vmatprep.subr.mxu1 %v702_v1 }
  0x3d   :  { %539 = vmatpush3.msra.mxu1 %v232_v37  ;;  %v345_v37 = vld [vmem:[#allocation8 + $0x110] sm:$0xff] }
  0x3e   :  { %v80_v9 = vrot.slane %v79_v8, 1  ;;  %540 = vmatprep.subr.mxu1 %v702_v1 }
  0x3f   :  { %541 = vmatpush3.msra.mxu1 %v231_v38  ;;  %v344_v38 = vld [vmem:[#allocation8 + $0x108] sm:$0xff] }
  0x40   :  { %v81_v10 = vadd.f32 %v80_v9, %v79_v8  ;;  %542 = vmatprep.subr.mxu1 %v702_v1 }
  0x41   :  { %543 = vmatpush3.msra.mxu1 %v230_v39  ;;  %v343_v39 = vld [vmem:[#allocation8 + $0x100] sm:$0xff] }
  0x42   :  { %v83_v11 = vmul.f32 0.125, %v81_v10  ;;  %544 = vmatprep.subr.mxu1 %v702_v1 }
  0x43   :  { %545 = vmatpush3.msra.mxu1 %v229_v40  ;;  %v238_v40 = vsub.s32 5, %v757_v24 }
  0x44   :  { %v84_v12 = vsub.f32 %v73_v3, %v83_v11  ;;  %546 = vmatprep.subr.mxu1 %v702_v1 }
  0x45   :  { %547 = vmatpush3.msra.mxu1 %v228_v41  ;;  %v239_v41 = vrot.slane %v760_v26, %v238_v40 }
  0x46   :  { %v85_v13 = vmul.f32 %v84_v12, %v84_v12  ;;  %548 = vmatprep.subr.mxu1 %v702_v1 }
  0x47   :  { %549 = vmatpush3.msra.mxu1 %v227_v42 }
  0x48   :  { %v86_v14 = vsel %vm74_vm0, %v85_v13, 0.0  ;;  %550 = vmatprep.subr.mxu1 %v702_v1  ;;  %v216_v13 = vsub.s32 4, %v757_v24 }
  0x49   :  { %v87_v15 = vrot.slane %v86_v14, 4  ;;  %551 = vmatpush3.msra.mxu1 %v226_v43 }
  0x4a   :  { %552 = vmatprep.subr.mxu1 %v702_v1 }
  0x4b   :  { %v88_v16 = vadd.f32 %v87_v15, %v86_v14  ;;  %553 = vmatpush3.msra.mxu1 %v225_v44 }
  0x4c   :  { %554 = vmatprep.subr.mxu1 %v702_v1 }
  0x4d   :  { %v89_v17 = vrot.slane %v88_v16, 2  ;;  %555 = vmatpush3.msra.mxu1 %v224_v45 }
  0x4e   :  { %556 = vmatprep.subr.mxu1 %v702_v1 }
  0x4f   :  { %v90_v18 = vadd.f32 %v89_v17, %v88_v16  ;;  %557 = vmatpush3.msra.mxu1 %v223_v46  ;;  %v217_v17 = vrot.slane %v760_v26, %v216_v13 }
  0x50   :  { %558 = vmatprep.subr.mxu1 %v702_v1 }
  0x51   :  { %v91_v19 = vrot.slane %v90_v18, 1  ;;  %559 = vmatpush3.msra.mxu1 %v222_v47 }
  0x52   :  { %560 = vmatprep.subr.mxu1 %v702_v1 }
  0x53   :  { %v92_v20 = vadd.f32 %v91_v19, %v90_v18  ;;  %561 = vmatpush3.msra.mxu1 %v221_v48 }
  0x54   :  { %562 = vmatprep.subr.mxu1 %v702_v1 }
  0x55   :  { %v93_v21 = vmul.f32 0.125, %v92_v20  ;;  %563 = vmatpush3.msra.mxu1 %v220_v49  ;;  %v358_v20 = vld [vmem:[#allocation8 + $0x178] sm:$0xff] }
  0x57   :  { %v94_v22 = vadd.f32 1e-05, %v93_v21  ;;  %v357_v21 = vld [vmem:[#allocation8 + $0x170] sm:$0xff] }
  0x59   :  { %610 = vrsqrt.f32 %v94_v22  ;;  %v356_v22 = vld [vmem:[#allocation8 + $0x168] sm:$0xff] }
  0x66   :  { %v611_v29 = vpop.eup %610 }
  0x67   :  { %v96_v30 = vmul.f32 %v611_v29, %v84_v12  ;;  %v211_v12 = vsub.s32 3, %v757_v24  ;;  %v353_v29 = vld [vmem:[#allocation8 + $0x150] sm:$0xff] }
  0x69   :  { %v101_v32 = vmul.f32 %v100_v28, %v96_v30  ;;  %v212_v14 = vrot.slane %v760_v26, %v211_v12  ;;  %v354_v28 = vld [vmem:[#allocation8 + $0x158] sm:$0xff]  ;;  %v352_v30 = vld [vmem:[#allocation8 + $0x148] sm:$0xff] }
  0x6b   :  { %v106_v33 = vadd.f32 %v105_v31, %v101_v32  ;;  %v351_v31 = vld [vmem:[#allocation8 + $0x140] sm:$0xff]  ;;  %v350_v32 = vld [vmem:[#allocation8 + $0x138] sm:$0xff] }
  0x6d   :  { %530 = vmatmul.mubr.msk.f32.vlgmr.msra.gmra.mxu0 %vm74_vm0, %v106_v33  ;;  %v349_v33 = vld [vmem:[#allocation8 + $0x130] sm:$0xff] }
  0x6e   :  { %599 = vmatprep.mubr.msk.f32.mxu0 %vm703_vm1, %v702_v1  ;;  %568 = vmatpush3.msra.mxu0 %v358_v20 }
  0x6f   :  { %569 = vmatprep.subr.mxu0 %v702_v1 }
  0x70   :  { %570 = vmatpush3.msra.mxu0 %v357_v21 }
  0x71   :  { %571 = vmatprep.subr.mxu0 %v702_v1 }
  0x72   :  { %572 = vmatpush3.msra.mxu0 %v356_v22 }
  0x73   :  { %573 = vmatprep.subr.mxu0 %v702_v1 }
  0x74   :  { %574 = vmatpush3.msra.mxu0 %v355_v23 }
  0x75   :  { %575 = vmatprep.subr.mxu0 %v702_v1 }
  0x76   :  { %576 = vmatpush3.msra.mxu0 %v354_v28 }
  0x77   :  { %577 = vmatprep.subr.mxu0 %v702_v1 }
  0x78   :  { %578 = vmatpush3.msra.mxu0 %v353_v29 }
  0x79   :  { %579 = vmatprep.subr.mxu0 %v702_v1 }
  0x7a   :  { %580 = vmatpush3.msra.mxu0 %v352_v30 }
  0x7b   :  { %581 = vmatprep.subr.mxu0 %v702_v1 }
  0x7c   :  { %582 = vmatpush3.msra.mxu0 %v351_v31 }
  0x7d   :  { %583 = vmatprep.subr.mxu0 %v702_v1 }
  0x7e   :  { %584 = vmatpush3.msra.mxu0 %v350_v32 }
  0x7f   :  { %585 = vmatprep.subr.mxu0 %v702_v1 }
  0x80   :  { %586 = vmatpush3.msra.mxu0 %v349_v33 }
  0x81   :  { %587 = vmatprep.subr.mxu0 %v702_v1 }
  0x82   :  { %588 = vmatpush3.msra.mxu0 %v348_v34 }
  0x83   :  { %589 = vmatprep.subr.mxu0 %v702_v1 }
  0x84   :  { %590 = vmatpush3.msra.mxu0 %v347_v35 }
  0x85   :  { %591 = vmatprep.subr.mxu0 %v702_v1 }
  0x86   :  { %592 = vmatpush3.msra.mxu0 %v346_v36 }
  0x87   :  { %593 = vmatprep.subr.mxu0 %v702_v1 }
  0x88   :  { %594 = vmatpush3.msra.mxu0 %v345_v37 }
  0x89   :  { %595 = vmatprep.subr.mxu0 %v702_v1 }
  0x8a   :  { %596 = vmatpush3.msra.mxu0 %v344_v38 }
  0x8b   :  { %597 = vmatprep.subr.mxu0 %v702_v1 }
  0x8c   :  { %598 = vmatpush3.msra.mxu0 %v343_v39 }
 0x12d   :  { %v182_v52 = vpop.f32.mrf.mxu0 }
 0x12e   :  { %v183_v54 = vadd.f32 %v182_v52, %v112_v51 }
 0x12f   :  { %v531_v55 = vpop.f32.mrf.mxu0 }
 0x130   :  { %vm186_vm2 = vcmp.gt.f32.partialorder %v183_v54, 0.0  ;;  %v188_v56 = vmul.f32 %v791_v53, %v183_v54 }
 0x132   :  { %v189_v57 = vsel %vm186_vm2, %v183_v54, %v188_v56 }
 0x133   :  { %v190_v58 = vrot.slane %v189_v57, 4 }
 0x135   :  { %v191_v59 = vadd.f32 %v190_v58, %v189_v57 }
 0x137   :  { %v192_v60 = vrot.slane %v191_v59, 2 }
 0x139   :  { %v193_v61 = vadd.f32 %v192_v60, %v191_v59 }
 0x13b   :  { %v194_v62 = vrot.slane %v193_v61, 1 }
 0x13d   :  { %v195_v63 = vadd.f32 %v194_v62, %v193_v61 }
 0x13f   :  { %v196_v0 = vmul.f32 0.125, %v195_v63 }
 0x141   :  { %v197_v2 = vsub.f32 %v189_v57, %v196_v0 }
 0x143   :  { %v198_v3 = vmul.f32 %v197_v2, %v197_v2 }
 0x145   :  { %v199_v4 = vrot.slane %v198_v3, 4 }
 0x147   :  { %v200_v5 = vadd.f32 %v199_v4, %v198_v3  ;;  %v339_v3 = vsub.s32 7, %v757_v24 }
 0x149   :  { %v201_v6 = vrot.slane %v200_v5, 2 }
 0x14b   :  { %v202_v7 = vadd.f32 %v201_v6, %v200_v5 }
 0x14d   :  { %v203_v8 = vrot.slane %v202_v7, 1 }
 0x14f   :  { %v204_v9 = vadd.f32 %v203_v8, %v202_v7  ;;  %v340_v7 = vrot.slane %v760_v26, %v339_v3 }
 0x151   :  { %v205_v10 = vmul.f32 0.125, %v204_v9 }
 0x153   :  { %v206_v11 = vadd.f32 1e-05, %v205_v10  ;;  %v72_v10 = vld [vmem:[#allocation6 + $0x8] sm:$0xff] }
 0x154   :  { %v458_v37 = vrot.slane %v72_v10, %v104_v27  ;;  %v463_v40 = vrot.slane %v72_v10, %v111_v50 }
 0x155   :  { %612 = vrsqrt.f32 %v206_v11  ;;  %v362_v11 = vrot.slane %v72_v10, %v99_v25 }
 0x162   :  { %v613_v15 = vpop.eup %612 }
 0x163   :  { %v208_v16 = vmul.f32 %v613_v15, %v197_v2  ;;  %v334_v2 = vsub.s32 6, %v757_v24 }
 0x165   :  { %v213_v18 = vmul.f32 %v212_v14, %v208_v16  ;;  %v335_v4 = vrot.slane %v760_v26, %v334_v2 }
 0x167   :  { %v218_v19 = vadd.f32 %v217_v17, %v213_v18 }
 0x169   :  { %565 = vmatmul.mubr.f32.vlgmr.msra.gmra.mxu1 %v218_v19 }
 0x229   :  { %v306_v42 = vpop.f32.mrf.mxu1 }
 0x22a   :  { %v307_v43 = vadd.f32 %v306_v42, %v239_v41  ;;  %v468_v42 = vrot.slane %v72_v10, %v211_v12 }
 0x22b   :  { %v566_v44 = vpop.f32.mrf.mxu1 }
 0x22c   :  { %vm310_vm3 = vcmp.gt.f32.partialorder %v307_v43, 0.0  ;;  %v311_v45 = vmul.f32 %v307_v43, %v791_v53 }
 0x22e   :  { %v312_v46 = vsel %vm310_vm3, %v307_v43, %v311_v45  ;;  %v472_v45 = vstv %s486_s3 }
 0x22f   :  { %v313_v47 = vrot.slane %v312_v46, 4 }
 0x231   :  { %v314_v48 = vadd.f32 %v313_v47, %v312_v46 }
 0x233   :  { %v315_v49 = vrot.slane %v314_v48, 2 }
 0x235   :  { %v316_v51 = vadd.f32 %v315_v49, %v314_v48 }
 0x237   :  { %v317_v52 = vrot.slane %v316_v51, 1 }
 0x239   :  { %v318_v54 = vadd.f32 %v317_v52, %v316_v51 }
 0x23b   :  { %v319_v55 = vmul.f32 0.125, %v318_v54 }
 0x23d   :  { %v320_v1 = vsub.f32 %v312_v46, %v319_v55 }
 0x23f   :  { %v321_v56 = vmul.f32 %v320_v1, %v320_v1 }
 0x241   :  { %v322_v57 = vrot.slane %v321_v56, 4 }
 0x243   :  { %v323_v58 = vadd.f32 %v322_v57, %v321_v56 }
 0x245   :  { %v324_v59 = vrot.slane %v323_v58, 2 }
 0x247   :  { %v325_v60 = vadd.f32 %v324_v59, %v323_v58 }
 0x249   :  { %v326_v61 = vrot.slane %v325_v60, 1 }
 0x24b   :  { %v327_v62 = vadd.f32 %v326_v61, %v325_v60 }
 0x24d   :  { %v328_v63 = vmul.f32 0.125, %v327_v62 }
 0x24f   :  { %v329_v0 = vadd.f32 1e-05, %v328_v63 }
 0x251   :  { %614 = vrsqrt.f32 %v329_v0 }
 0x25e   :  { %v615_v5 = vpop.eup %614 }
 0x25f   :  { %v331_v6 = vmul.f32 %v615_v5, %v320_v1 }
 0x261   :  { %v336_v8 = vmul.f32 %v335_v4, %v331_v6 }
 0x263   :  { %v341_v9 = vadd.f32 %v340_v7, %v336_v8 }
 0x265   :  { %600 = vmatmul.mubr.f32.vlgmr.msra.gmra.mxu0 %v341_v9 }
 0x325   :  { %v429_v13 = vpop.f32.mrf.mxu0 }
 0x326   :  { %v430_v14 = vadd.f32 %v429_v13, %v362_v11 }
 0x327   :  { %v601_v15 = vpop.f32.mrf.mxu0 }
 0x328   :  { %vm433_vm4 = vcmp.gt.f32.partialorder %v430_v14, 0.0  ;;  %v434_v16 = vmul.f32 %v430_v14, %v791_v53 }
 0x32a   :  { %v435_v17 = vsel %vm433_vm4, %v430_v14, %v434_v16 }
 0x32b   :  { %v436_v18 = vrot.slane %v435_v17, 4 }
 0x32d   :  { %v437_v19 = vadd.f32 %v436_v18, %v435_v17 }
 0x32f   :  { %v438_v20 = vrot.slane %v437_v19, 2 }
 0x331   :  { %v439_v21 = vadd.f32 %v438_v20, %v437_v19 }
 0x333   :  { %v440_v22 = vrot.slane %v439_v21, 1 }
 0x335   :  { %v441_v26 = vadd.f32 %v440_v22, %v439_v21 }
 0x337   :  { %v442_v23 = vmul.f32 0.125, %v441_v26 }
 0x339   :  { %v443_v28 = vsub.f32 %v435_v17, %v442_v23 }
 0x33b   :  { %v444_v29 = vmul.f32 %v443_v28, %v443_v28 }
 0x33d   :  { %v445_v30 = vrot.slane %v444_v29, 4 }
 0x33f   :  { %v446_v31 = vadd.f32 %v445_v30, %v444_v29 }
 0x341   :  { %v447_v32 = vrot.slane %v446_v31, 2 }
 0x343   :  { %v448_v25 = vadd.f32 %v447_v32, %v446_v31 }
 0x345   :  { %v449_v33 = vrot.slane %v448_v25, 1 }
 0x347   :  { %v450_v34 = vadd.f32 %v449_v33, %v448_v25 }
 0x349   :  { %v451_v35 = vmul.f32 0.125, %v450_v34 }
 0x34b   :  { %v452_v36 = vadd.f32 1e-05, %v451_v35 }
 0x34d   :  { %616 = vrsqrt.f32 %v452_v36 }
 0x35a   :  { %v617_v38 = vpop.eup %616 }
 0x35b   :  { %v454_v39 = vmul.f32 %v617_v38, %v443_v28 }
 0x35d   :  { %v459_v41 = vmul.f32 %v458_v37, %v454_v39 }
 0x35f   :  { %v464_v43 = vadd.f32 %v463_v40, %v459_v41 }
 0x361   :  { %v469_v44 = vmul.f32 %v468_v42, %v464_v43 }
 0x363   :  { %470 = vadd.xlane.f32.xlu0 %v469_v44 }
 0x3ec   :  { %v471_v46 = vpop.xlane.xlu0 %470 }
 0x3ed   :  { %v473_v47 = vadd.f32 %v472_v45, %v471_v46 }
 0x3ef   :  { %vm474_vm5 = vcmp.gt.f32.partialorder %v473_v47, 0.0  ;;  %v475_v48 = vmul.f32 %v473_v47, %v791_v53 }
 0x3f1   :  { %v476_v27 = vsel %vm474_vm5, %v473_v47, %v475_v48 }
 0x3f2   :  { %478 = vst.msk [vmem:[%s839_s4] sm:$0xff] %vm477_vm6, %v476_v27 }
 0x3f3   :  { %483 = vsyncpa [#allocation3], 1 }
 0x3f4   :  { %484 = vsyncpa [#allocation7], 1 }
 0x3f5   :  { %485 = vsyncpa [#allocation4], 1 }

</bundles_post_ra>
